<compile_context>
chip_gen: v5e
topology: v5e:2x2
jax: 0.10.0
libtpu: 0.0.40
codegen_flags: <defaults>
</compile_context>

<pallas_src>
import functools
import math

import jax
import jax.numpy as jnp
import numpy as np
from jax.experimental import pallas as pl
from jax.experimental.pallas import tpu as pltpu

DIM = 256          # `dim` argument of Classifier
NUM_CLASS = 16     # `num_classes` argument of Classifier
EPS_LN = 1e-5      # nn.LayerNorm default eps
LANE = 128
SUBLANE = 8


def _round_up(x, m):
    return (x + m - 1) // m * m


def _pick_bm(M):
    """Row-tile size: whole batch for tiny M, otherwise large blocks (<=1024)
    split into >=2 blocks so the parallel grid axis can use both TensorCores."""
    if M <= 256:
        return _round_up(max(M, SUBLANE), SUBLANE)
    half = _round_up(-(-M // 2), SUBLANE)
    return min(half, 1024)


# ------------------------------ Pallas kernel -------------------------------

def _ln_linear_kernel(x_ref, w_ref, bias_ref, o_ref, *, eps, n_out):
    """Fused LayerNorm (f32, one-pass stats) + Linear (bf16 MXU, f32 acc).

    gamma/beta are pre-folded into w_ref/bias_ref, so the kernel only needs
    the plain normalization.  Rows beyond M in the (masked) partial block may
    compute garbage; their stores are masked so it never escapes.
    """
    x = x_ref[...].astype(jnp.float32)
    mu = jnp.mean(x, axis=-1, keepdims=True)
    ex2 = jnp.mean(x * x, axis=-1, keepdims=True)
    var = ex2 - mu * mu
    y = (x - mu) * jax.lax.rsqrt(var + eps)
    out = jnp.dot(y.astype(jnp.bfloat16), w_ref[...],
                  preferred_element_type=jnp.float32)
    o_ref[...] = (out[:, :n_out] + bias_ref[...]).astype(o_ref.dtype)


def _ln_linear(x2, w, bias, *, eps=EPS_LN):
    """x2: (M, D) f32; w: (D, Np) bf16 (gamma folded); bias: (1, N) f32."""
    M, D = x2.shape
    Np = w.shape[1]
    N = bias.shape[1]
    bm = _pick_bm(M)

    return pl.pallas_call(
        functools.partial(_ln_linear_kernel, eps=eps, n_out=N),
        out_shape=jax.ShapeDtypeStruct((M, N), jnp.float32),
        grid_spec=pltpu.PrefetchScalarGridSpec(
            num_scalar_prefetch=0,
            grid=(pl.cdiv(M, bm),),
            in_specs=[pl.BlockSpec((bm, D), lambda i: (i, 0)),
                      pl.BlockSpec((D, Np), lambda i: (0, 0)),
                      pl.BlockSpec((1, N), lambda i: (0, 0))],
            out_specs=pl.BlockSpec((bm, N), lambda i: (i, 0))),
        compiler_params=pltpu.CompilerParams(
            dimension_semantics=("parallel",)),
    )(x2, w, bias)


# ------------------------- parameter prep / forward --------------------------

def prepare_params(gamma, beta, weight, bias):
    """One-time prep (hoisted out of forward):
      W'[d,n] = gamma_d * W[n,d]   (computed in f32, single bf16 cast),
      bias'_n = bias_n + sum_d beta_d * W[n,d]          (f32),
    with the output dim of W' padded to a multiple of 128 lanes for the MXU.
    """
    D = gamma.shape[0]
    N = weight.shape[0]
    Np = _round_up(N, LANE)
    wt = weight.T.astype(jnp.float32)                        # (D, N)
    w_fold = wt * gamma.astype(jnp.float32)[:, None]          # gamma into columns
    bias_fold = bias.astype(jnp.float32) + beta.astype(jnp.float32) @ wt  # (N,)
    w_p = jnp.zeros((D, Np), jnp.bfloat16).at[:, :N].set(
        w_fold.astype(jnp.bfloat16))
    return dict(w=w_p, bias=bias_fold.reshape(1, N))


def classifier_forward(params, x, *, num_classes):
    """x: (..., dim) -> (..., num_classes); matches Classifier.forward."""
    lead = x.shape[:-1]
    D = x.shape[-1]
    x2 = x.reshape(-1, D)
    out = _ln_linear(x2, params['w'], params['bias'])
    return out.reshape(lead + (num_classes,))


# ----------------------------------- main ------------------------------------

def _reference(x, gamma, beta, weight, bias):
    mu = jnp.mean(x, axis=-1, keepdims=True)
    var = jnp.mean((x - mu) ** 2, axis=-1, keepdims=True)
    xn = (x - mu) * jax.lax.rsqrt(var + EPS_LN) * gamma + beta
    return xn @ weight.T + bias


if __name__ == "__main__":
    key = jax.random.PRNGKey(0)
    k1, k2, k3, k4, kx, ky = jax.random.split(key, 6)
    dim, num_classes, batch = DIM, NUM_CLASS, 2

    # LayerNorm params (perturbed so the test is non-trivial) and Linear
    # params (PyTorch-style uniform init).
    gamma = 1.0 + 0.1 * jax.random.normal(k1, (dim,), jnp.float32)
    beta = 0.1 * jax.random.normal(k2, (dim,), jnp.float32)
    bound = 1.0 / math.sqrt(dim)
    weight = jax.random.uniform(k3, (num_classes, dim), jnp.float32, -bound, bound)
    bias = jax.random.uniform(k4, (num_classes,), jnp.float32, -bound, bound)
    x = jax.random.normal(kx, (batch, dim), jnp.float32)

    params = prepare_params(gamma, beta, weight, bias)
    fwd = jax.jit(functools.partial(classifier_forward, num_classes=num_classes))

    # Small demo batch (single block).
    out = jax.block_until_ready(fwd(params, x))
    assert out.shape == (batch, num_classes), out.shape
    ref = _reference(x, gamma, beta, weight, bias)
    np.testing.assert_allclose(np.asarray(out), np.asarray(ref),
                               rtol=5e-2, atol=5e-2)  # bf16 MXU operands, f32 acc
    assert bool(jnp.all(jnp.isfinite(out)))

    # Ragged batch (exercises the masked partial last block / cdiv grid path).
    x19 = jax.random.normal(ky, (19, dim), jnp.float32)
    out19 = jax.block_until_ready(fwd(params, x19))
    ref19 = _reference(x19, gamma, beta, weight, bias)
    np.testing.assert_allclose(np.asarray(out19), np.asarray(ref19),
                               rtol=5e-2, atol=5e-2)
    assert bool(jnp.all(jnp.isfinite(out19)))

    print("KERNEL_OK")
</pallas_src>

<mosaic_0001>
module attributes {stable_mosaic.version = 11 : i64} {
  func.func @_ln_linear_kernel(%arg0: i32, %arg1: memref<8x256xf32, #tpu.memory_space<vmem>>, %arg2: memref<256x128xbf16, #tpu.memory_space<vmem>>, %arg3: memref<1x16xf32, #tpu.memory_space<vmem>>, %arg4: memref<8x16xf32, #tpu.memory_space<vmem>>) attributes {dimension_semantics = [#tpu.dimension_semantics<parallel>], iteration_bounds = array<i64: 1>, scalar_prefetch = 0 : i64, scratch_operands = 0 : i64, tpu.core_type = #tpu.core_type<tc>, window_params = [{transform_indices = @transform_0, window_bounds = array<i64: 8, 256>}, {pipeline_mode = #tpu.pipeline_mode<synchronous>, transform_indices = @transform_1, window_bounds = array<i64: 256, 128>}, {pipeline_mode = #tpu.pipeline_mode<synchronous>, transform_indices = @transform_2, window_bounds = array<i64: 1, 16>}, {transform_indices = @transform_3, window_bounds = array<i64: 8, 16>}]} {
    %c0 = arith.constant 0 : index
    %c0_0 = arith.constant 0 : index
    %0 = vector.load %arg1[%c0, %c0_0] : memref<8x256xf32, #tpu.memory_space<vmem>>, vector<8x256xf32>
    %cst = arith.constant dense<0.000000e+00> : vector<8xf32>
    %1 = vector.multi_reduction <add>, %0, %cst [1] : vector<8x256xf32> to vector<8xf32>
    %2 = vector.shape_cast %1 : vector<8xf32> to vector<8x1xf32>
    %cst_1 = arith.constant 2.560000e+02 : f32
    %3 = vector.broadcast %cst_1 : f32 to vector<8x1xf32>
    %4 = arith.divf %2, %3 : vector<8x1xf32>
    %5 = arith.mulf %0, %0 : vector<8x256xf32>
    %cst_2 = arith.constant dense<0.000000e+00> : vector<8xf32>
    %6 = vector.multi_reduction <add>, %5, %cst_2 [1] : vector<8x256xf32> to vector<8xf32>
    %7 = vector.shape_cast %6 : vector<8xf32> to vector<8x1xf32>
    %cst_3 = arith.constant 2.560000e+02 : f32
    %8 = vector.broadcast %cst_3 : f32 to vector<8x1xf32>
    %9 = arith.divf %7, %8 : vector<8x1xf32>
    %10 = arith.mulf %4, %4 : vector<8x1xf32>
    %11 = arith.subf %9, %10 : vector<8x1xf32>
    %12 = vector.broadcast %4 : vector<8x1xf32> to vector<8x256xf32>
    %13 = arith.subf %0, %12 : vector<8x256xf32>
    %cst_4 = arith.constant 9.99999974E-6 : f32
    %14 = vector.broadcast %cst_4 : f32 to vector<8x1xf32>
    %15 = arith.addf %11, %14 : vector<8x1xf32>
    %16 = math.rsqrt %15 : vector<8x1xf32>
    %17 = vector.broadcast %16 : vector<8x1xf32> to vector<8x256xf32>
    %18 = arith.mulf %13, %17 : vector<8x256xf32>
    %19 = arith.truncf %18 : vector<8x256xf32> to vector<8x256xbf16>
    %c0_5 = arith.constant 0 : index
    %c0_6 = arith.constant 0 : index
    %20 = vector.load %arg2[%c0_5, %c0_6] : memref<256x128xbf16, #tpu.memory_space<vmem>>, vector<256x128xbf16>
    %cst_7 = arith.constant dense<0.000000e+00> : vector<8x128xf32>
    %21 = tpu.matmul %19, %20, %cst_7 {dimension_numbers = #tpu.dot_dimension_numbers<[1], [0], [0], [1], [0, 0, 1, 1], [], []>} : vector<8x256xbf16>, vector<256x128xbf16>, vector<8x128xf32> -> vector<8x128xf32>
    %22 = vector.extract_strided_slice %21 {offsets = [0, 0], sizes = [8, 16], strides = [1, 1]} : vector<8x128xf32> to vector<8x16xf32>
    %c0_8 = arith.constant 0 : index
    %c0_9 = arith.constant 0 : index
    %23 = vector.load %arg3[%c0_8, %c0_9] : memref<1x16xf32, #tpu.memory_space<vmem>>, vector<1x16xf32>
    %24 = vector.broadcast %23 : vector<1x16xf32> to vector<8x16xf32>
    %25 = arith.addf %22, %24 : vector<8x16xf32>
    %c0_10 = arith.constant 0 : index
    %c0_11 = arith.constant 0 : index
    %26 = vector.load %arg4[%c0_10, %c0_11] : memref<8x16xf32, #tpu.memory_space<vmem>>, vector<8x16xf32>
    tpu.vector_store %arg4[%c0_10, %c0_11], %25 {strides = array<i32>} : memref<8x16xf32, #tpu.memory_space<vmem>>, vector<8x16xf32>,
    return
  }
  func.func @transform_0(%arg0: i32) -> (i32, i32) {
    %c0_i32 = arith.constant 0 : i32
    %c0_i32_0 = arith.constant 0 : i32
    return %arg0, %c0_i32 : i32, i32
  }
  func.func @transform_1(%arg0: i32) -> (i32, i32) {
    %c0_i32 = arith.constant 0 : i32
    %c0_i32_0 = arith.constant 0 : i32
    %c0_i32_1 = arith.constant 0 : i32
    return %c0_i32, %c0_i32_0 : i32, i32
  }
  func.func @transform_2(%arg0: i32) -> (i32, i32) {
    %c0_i32 = arith.constant 0 : i32
    %c0_i32_0 = arith.constant 0 : i32
    %c0_i32_1 = arith.constant 0 : i32
    return %c0_i32, %c0_i32_0 : i32, i32
  }
  func.func @transform_3(%arg0: i32) -> (i32, i32) {
    %c0_i32 = arith.constant 0 : i32
    %c0_i32_0 = arith.constant 0 : i32
    return %arg0, %c0_i32 : i32, i32
  }
}

</mosaic_0001>

<bundles_post_ra>
// kernel: classifier_forward.1
= control target key start
LH: loop header
LB: loop body
LE: loop exit
PB: predicated region body
PF: predicated region fallthrough
CT: control target
= control target key end

     0   :  { %8 = vsyncpa [#allocation3], 0  ;;  %s643_s0 = inlined_call_operand.hbm [shape: f32[2,256], index: 0, kind: input, shape index: {}]   ;;  %s644_s1 = inlined_call_operand.hbm [shape: bf16[256,128], index: 1, kind: input, shape index: {}]   ;;  %s645_s2 = inlined_call_operand.hbm [shape: f32[1,16], index: 2, kind: input, shape index: {}]   ;;  %s646_s3 = inlined_call_operand.hbm [shape: f32[2,16], index: 3, kind: output, shape index: {}]  }
   0x1   :  { %9 = vsyncpa [#allocation6], 0 }
   0x2   :  { %10 = vsyncpa [#allocation4], 0 }
   0x3   :  { %14 = vsyncadd [#allocation3], 192  ;;  %s28_s14 = sshll.u32 %s644_s1, 4  ;;  %s574_s15 = smov [#allocation5]   ;;  %s29_s14 = int_to_ptr.hbm [resolvable:$true] %s28_s14 }
   0x4   :  { %s30_s16 = sshll.u32 %s574_s15, 4  ;;  %s15_s19 = sshll.u32 %s643_s0, 4  ;;  %s31_s16 = int_to_ptr.vmem [resolvable:$true] %s30_s16  ;;  %s16_s19 = int_to_ptr.hbm [resolvable:$true] %s15_s19 }
   0x5   :  { %s575_s20 = smov 64   ;;  %s576_s21 = smov 4  }
   0x6   :  { %36 = dma.hbm_to_vmem [thread:$0]  %s29_s14, 2048, %s31_s16, [#allocation6], %s575_s20, %s575_s20, %s576_s21  }
   0x7   :  { %s577_s22 = smov [#allocation2]   ;;  %s42_s26 = sshll.u32 %s645_s2, 4  ;;  %s43_s26 = int_to_ptr.hbm [resolvable:$true] %s42_s26 }
   0x8   :  { %s17_s23 = sshll.u32 %s577_s22, 4  ;;  %s578_s1 = smov [#allocation7]   ;;  %s18_s23 = int_to_ptr.vmem [resolvable:$true] %s17_s23 }
   0x9   :  { %23 = dma.hbm_to_vmem [thread:$0]  %s16_s19, 64, %s18_s23, [#allocation3], %s575_s20, %s575_s20, %s576_s21  }
   0xa   :  { %s44_s27 = sshll.u32 %s578_s1, 4  ;;  %s45_s27 = int_to_ptr.vmem [resolvable:$true] %s44_s27 }
   0xb   :  { %47 = dma.hbm_to_vmem [thread:$0]  %s43_s26, 16, %s45_s27, [#allocation6]  }
   0xc   :  { %568 = dma.done.wait [#allocation3], 256  }
   0xd   :  { %569 = vsyncadd [#allocation3], 4294967040 }
   0xe   :  { %570 = dma.done.wait [#allocation6], 2064  }
   0xf   :  { %571 = vsyncadd [#allocation6], 4294965232  ;;  %v616_v0 = vld [vmem:[#allocation2] sm:$0xf]  ;;  %v618_v1 = vld [vmem:[#allocation2 + $0x4] sm:$0xf] }
  0x10   :  { %v620_v2 = vld [vmem:[#allocation2 + $0x8] sm:$0xf]  ;;  %v622_v3 = vld [vmem:[#allocation2 + $0xc] sm:$0xf]  ;;  %68 = vst [vmem:[#allocation1] ss:$4 sm:$0xff] %v616_v0  ;;  %v90_v4 = vmul.f32 %v616_v0, %v616_v0  ;;  %v91_v5 = vmul.f32 %v618_v1, %v618_v1 }
  0x11   :  { %70 = vst [vmem:[#allocation1 + $0x1] ss:$4 sm:$0xff] %v618_v1  ;;  %v92_v6 = vmul.f32 %v620_v2, %v620_v2  ;;  %v93_v9 = vmul.f32 %v622_v3, %v622_v3  ;;  %v579_v14 = vmov 256.0   ;;  %v445_v16 = vld [vmem:[#allocation5 + $0x38] sm:$0xff]  ;;  %v444_v19 = vld [vmem:[#allocation5 + $0x30] sm:$0xff]  ;;  %v443_v22 = vld [vmem:[#allocation5 + $0x28] sm:$0xff] }
  0x12   :  { %72 = vst [vmem:[#allocation1 + $0x2] ss:$4 sm:$0xff] %v620_v2  ;;  %468 = vrcp.f32 %v579_v14  ;;  %v453_v17 = vld [vmem:[#allocation5 + $0x78] sm:$0xff]  ;;  %321 = vmatpush.bf16.msra.mxu0 %v445_v16  ;;  %v452_v20 = vld [vmem:[#allocation5 + $0x70] sm:$0xff]  ;;  %v451_v23 = vld [vmem:[#allocation5 + $0x68] sm:$0xff]  ;;  %vm352_vm4 = vcmask 130048  }
  0x13   :  { %74 = vst [vmem:[#allocation1 + $0x3] ss:$4 sm:$0xff] %v622_v3  ;;  %334 = vmatpush.bf16.msra.mxu1 %v453_v17  ;;  %v442_v25 = vld [vmem:[#allocation5 + $0x20] sm:$0xff]  ;;  %v441_v29 = vld [vmem:[#allocation5 + $0x18] sm:$0xff]  ;;  %v440_v33 = vld [vmem:[#allocation5 + $0x10] sm:$0xff] }
  0x14   :  { %v450_v26 = vld [vmem:[#allocation5 + $0x60] sm:$0xff]  ;;  %v449_v30 = vld [vmem:[#allocation5 + $0x58] sm:$0xff]  ;;  %v448_v34 = vld [vmem:[#allocation5 + $0x50] sm:$0xff]  ;;  %v580_v44 = vmov 269488144  }
  0x15   :  { %v439_v36 = vld [vmem:[#allocation5 + $0x8] sm:$0xff]  ;;  %v438_v41 = vld [vmem:[#allocation5] sm:$0xff]  ;;  %v117_v45 = vunpack.c.l.s4 %v580_v44  ;;  %v581_v46 = vmov 842150450   ;;  %v582_v48 = vmov 1414812756  }
  0x16   :  { %322 = vmatpush.bf16.msra.mxu0 %v444_v19  ;;  %v447_v37 = vld [vmem:[#allocation5 + $0x48] sm:$0xff]  ;;  %v446_v42 = vld [vmem:[#allocation5 + $0x40] sm:$0xff]  ;;  %v121_v47 = vunpack.c.l.s4 %v581_v46  ;;  %v125_v49 = vunpack.c.l.s4 %v582_v48  ;;  %v583_v51 = vmov 1987475062  }
  0x17   :  { %335 = vmatpush.bf16.msra.mxu1 %v452_v20  ;;  %v129_v52 = vunpack.c.l.s4 %v583_v51  ;;  %v118_v54 = vunpack.c.0.s8 %v117_v45 }
  0x18   :  { %v469_v15 = vpop.eup %468  ;;  %v122_v55 = vunpack.c.0.s8 %v121_v47  ;;  %v126_v56 = vunpack.c.0.s8 %v125_v49 }
  0x19   :  { %v83_v18 = vmul.f32 256.0, %v469_v15  ;;  %vm87_vm0 = vweird.f32 %v469_v15  ;;  %v130_v58 = vunpack.c.0.s8 %v129_v52 }
  0x1a   :  { %v75_v7 = vld.sshfl [vmem:[#allocation1] sm:$0xff pattern:$0x73625140]  ;;  %v76_v8 = vld.sshfl [vmem:[#allocation1 + $0x8] sm:$0xff pattern:$0x73625140]  ;;  %323 = vmatpush.bf16.msra.mxu0 %v443_v22 }
  0x1b   :  { %v79_v10 = vadd.f32 %v76_v8, %v75_v7  ;;  %98 = vst [vmem:[#allocation1] ss:$4 sm:$0xff] %v90_v4  ;;  %v84_v21 = vsub.f32 1.0, %v83_v18  ;;  %336 = vmatpush.bf16.msra.mxu1 %v451_v23 }
  0x1c   :  { %100 = vst [vmem:[#allocation1 + $0x1] ss:$4 sm:$0xff] %v91_v5 }
  0x1d   :  { %80 = vadd.xlane.f32.xlu0 %v79_v10  ;;  %102 = vst [vmem:[#allocation1 + $0x2] ss:$4 sm:$0xff] %v92_v6  ;;  %v85_v24 = vmul.f32 %v469_v15, %v84_v21 }
  0x1e   :  { %104 = vst [vmem:[#allocation1 + $0x3] ss:$4 sm:$0xff] %v93_v9  ;;  %324 = vmatpush.bf16.msra.mxu0 %v442_v25 }
  0x1f   :  { %v86_v27 = vadd.f32 %v469_v15, %v85_v24  ;;  %337 = vmatpush.bf16.msra.mxu1 %v450_v26 }
  0x21   :  { %v88_v31 = vsel %vm87_vm0, %v469_v15, %v86_v27 }
  0x22   :  { %325 = vmatpush.bf16.msra.mxu0 %v441_v29 }
  0x23   :  { %338 = vmatpush.bf16.msra.mxu1 %v449_v30 }
  0x25   :  { %v105_v11 = vld.sshfl [vmem:[#allocation1] sm:$0xff pattern:$0x73625140]  ;;  %v106_v12 = vld.sshfl [vmem:[#allocation1 + $0x8] sm:$0xff pattern:$0x73625140] }
  0x26   :  { %v109_v13 = vadd.f32 %v106_v12, %v105_v11  ;;  %326 = vmatpush.bf16.msra.mxu0 %v440_v33 }
  0x27   :  { %339 = vmatpush.bf16.msra.mxu1 %v448_v34 }
  0x28   :  { %110 = vadd.xlane.f32.xlu0 %v109_v13 }
  0x2a   :  { %327 = vmatpush.bf16.msra.mxu0 %v439_v36 }
  0x2b   :  { %340 = vmatpush.bf16.msra.mxu1 %v447_v37 }
  0x2e   :  { %328 = vmatpush.bf16.msra.mxu0 %v438_v41 }
  0x2f   :  { %341 = vmatpush.bf16.msra.mxu1 %v446_v42 }
  0x90   :  { %v81_v28 = vpop.xlane.xlu0 %80 }
  0x91   :  { %v89_v32 = vmul.f32 %v88_v31, %v81_v28 }
  0x93   :  { %v113_v38 = vmul.f32 %v89_v32, %v89_v32  ;;  %v119_v60 = vperm.slane %v89_v32, %v118_v54  ;;  %v123_v61 = vperm.slane %v89_v32, %v122_v55  ;;  %v127_v62 = vperm.slane %v89_v32, %v126_v56 }
  0x94   :  { %v131_v4 = vperm.slane %v89_v32, %v130_v58 }
  0x95   :  { %v136_v6 = vsub.f32 %v616_v0, %v119_v60  ;;  %v137_v7 = vsub.f32 %v618_v1, %v123_v61  ;;  %v138_v8 = vsub.f32 %v620_v2, %v127_v62  ;;  %v467_v2 = vld [vmem:[#allocation7] ss:$0 sm:$0xff] }
  0x96   :  { %v139_v14 = vsub.f32 %v622_v3, %v131_v4 }
  0x9b   :  { %v111_v35 = vpop.xlane.xlu0 %110 }
  0x9c   :  { %v112_v39 = vmul.f32 %v111_v35, %v88_v31 }
  0x9e   :  { %v114_v40 = vsub.f32 %v112_v39, %v113_v38 }
  0xa0   :  { %v140_v43 = vadd.f32 1e-05, %v114_v40 }
  0xa2   :  { %470 = vrsqrt.f32 %v140_v43  ;;  %vm147_vm2 = vweird.f32 %v140_v43 }
  0xa8   :  { %v471_v50 = vpop.eup %470 }
  0xa9   :  { %v142_v53 = vmul.f32 %v471_v50, %v140_v43  ;;  %vm148_vm1 = vweird.f32 %v471_v50 }
  0xaa   :  { %vm149_vm3 = vmor %vm147_vm2, %vm148_vm1 }
  0xab   :  { %v143_v57 = vmul.f32 %v471_v50, %v142_v53 }
  0xad   :  { %v144_v59 = vmul.f32 0.5, %v143_v57 }
  0xaf   :  { %v145_v63 = vsub.f32 1.5, %v144_v59 }
  0xb1   :  { %v146_v5 = vmul.f32 %v471_v50, %v145_v63 }
  0xb3   :  { %v150_v9 = vsel %vm149_vm3, %v471_v50, %v146_v5 }
  0xb4   :  { %v155_v10 = vperm.slane %v150_v9, %v118_v54  ;;  %v159_v11 = vperm.slane %v150_v9, %v122_v55  ;;  %v163_v12 = vperm.slane %v150_v9, %v126_v56  ;;  %v167_v13 = vperm.slane %v150_v9, %v130_v58 }
  0xb6   :  { %v172_v15 = vmul.f32 %v155_v10, %v136_v6  ;;  %v173_v16 = vmul.f32 %v159_v11, %v137_v7  ;;  %v174_v17 = vmul.f32 %v163_v12, %v138_v8  ;;  %v175_v18 = vmul.f32 %v167_v13, %v139_v14 }
  0xb8   :  { %180 = vst [vmem:[#allocation1] ss:$4 sm:$0xff] %v172_v15 }
  0xb9   :  { %182 = vst [vmem:[#allocation1 + $0x1] ss:$4 sm:$0xff] %v173_v16 }
  0xba   :  { %184 = vst [vmem:[#allocation1 + $0x2] ss:$4 sm:$0xff] %v174_v17 }
  0xbb   :  { %186 = vst [vmem:[#allocation1 + $0x3] ss:$4 sm:$0xff] %v175_v18 }
  0xc2   :  { %v187_v0 = vld.sshfl [vmem:[#allocation1] sm:$0xff pattern:$0x73625140]  ;;  %v188_v19 = vld.sshfl [vmem:[#allocation1 + $0x8] sm:$0xff pattern:$0x73625140] }
  0xc3   :  { %v191_v1 = vpack.c.bf16 %v187_v0, %v187_v0  ;;  %v192_v20 = vpack.c.bf16 %v188_v19, %v188_v19 }
  0xc5   :  { %329 = vmatmul.bf16.vlgmr.msra.gmra.mxu0 %v191_v1  ;;  %342 = vmatmul.bf16.vlgmr.msra.gmra.mxu1 %v192_v20 }
 0x142   :  { %v330_v21 = vpop.f32.mrf.mxu0  ;;  %v343_v22 = vpop.f32.mrf.mxu1 }
 0x143   :  { %v344_v23 = vadd.f32 %v343_v22, %v330_v21 }
 0x145   :  { %v351_v3 = vadd.f32 %v467_v2, %v344_v23 }
 0x147   :  { %353 = vst.msk [vmem:[#allocation8] sm:$0xff] %vm352_vm4, %v351_v3 }
 0x14a   :  { %v332_v24 = vpop.f32.mrf.mxu0  ;;  %v345_v25 = vpop.f32.mrf.mxu1 }
 0x14b   :  { %357 = vsyncadd [#allocation4], 96  ;;  %s360_s28 = sshll.u32 %s646_s3, 4  ;;  %s584_s29 = smov [#allocation8]   ;;  %s361_s28 = int_to_ptr.hbm [resolvable:$true] %s360_s28 }
 0x14c   :  { %s358_s30 = sshll.u32 %s584_s29, 4  ;;  %s585_s4 = smov 32   ;;  %s359_s30 = int_to_ptr.vmem [resolvable:$true] %s358_s30 }
 0x14d   :  { %s586_s5 = smov 2  }
 0x14e   :  { %366 = dma.vmem_to_hbm [thread:$0]  %s359_s30, 32, %s361_s28, [#allocation4], %s585_s4, %s585_s4, %s586_s5  }
 0x14f   :  { %572 = dma.done.wait [#allocation4], 128  }
 0x150   :  { %573 = vsyncadd [#allocation4], 4294967168 }
 0x151   :  { %371 = vsyncpa [#allocation3], 1 }
 0x152   :  { %372 = vsyncpa [#allocation6], 1 }
 0x153   :  { %373 = vsyncpa [#allocation4], 1 }

</bundles_post_ra>
